<compile_context>
chip_gen: v7x
topology: tpu7x:2x2x1
jax: 0.10.0
libtpu: 0.0.40
codegen_flags: <defaults>
</compile_context>

<pallas_src>
import functools

import jax
import jax.numpy as jnp
from jax import lax
from jax.experimental import pallas as pl
from jax.experimental.pallas import tpu as pltpu

GAMMA = 2        # module default
LANE = 128       # TPU lane width
SUBLANE = 8      # TPU sublane count (f32)


def _focal_kernel(pred_ref, tgt_ref, out_ref, acc_ref, *, gamma, binary_targets,
                  acc_chunks, n_inner, n_tiles, tile3, rows3, mask_tail,
                  has_phantom):
    """Grid (j, k): j = 2-way parallel outer split, k = streaming reduction."""
    j = pl.program_id(0)
    k = pl.program_id(1)

    @pl.when(k == 0)
    def _():
        acc_ref[...] = jnp.zeros_like(acc_ref)

    def accumulate():
        x = pred_ref[...].astype(jnp.float32)      # (T3, 8, 128) logits
        t = tgt_ref[...].astype(jnp.float32)       # (T3, 8, 128) targets

        if mask_tail:
            # The last real tile may overhang the array; Pallas gives undefined
            # data there.  Replace with the zero-loss sentinel
            # (logit=+100, target=1) so those rows contribute exactly 0.
            blk = j * n_inner + k
            r3 = lax.broadcasted_iota(jnp.int32, x.shape, 0)
            valid = (r3 + blk * tile3) < rows3
            x = jnp.where(valid, x, 100.0)
            t = jnp.where(valid, t, 1.0)

        ax = jnp.abs(x)
        e = jnp.exp(-ax)                            # EUP #1, never overflows
        lp = jnp.log1p(e)                           # EUP #2
        if binary_targets:
            # Exact for targets in {0, 1}; avoids the third exp.
            match = (t > 0.5) == (x >= 0.0)
            bce = lp + jnp.where(match, 0.0, ax)
            inv = pl.reciprocal(1.0 + e, approx=True)   # near-free EUP slot
            omp = jnp.where(match, e, 1.0) * inv        # == 1 - exp(-bce)
        else:
            # General (soft-target) path: stable BCE-with-logits + one more exp.
            bce = jnp.maximum(x, 0.0) - x * t + lp
            omp = 1.0 - jnp.exp(-bce)

        if gamma == 2:
            w = omp * omp                           # strength-reduced pow
        elif float(gamma) == int(gamma) and int(gamma) >= 0:
            w = lax.integer_pow(omp, int(gamma))
        else:
            w = omp ** float(gamma)                 # static Python exponent
        focal = w * bce                             # weight=None -> plain bce

        # Fold the tile onto `acc_chunks` independent (8,128) accumulators
        # (breaks the loop-carried VPU add chain); no in-kernel reshape.
        c = focal.shape[0] // acc_chunks
        for i in range(acc_chunks):
            acc_ref[i] += focal[i * c:(i + 1) * c].sum(axis=0)

    if has_phantom:
        # The rectangular (2, n_inner) grid may overhang the real tile count;
        # skip compute + accumulation for phantom trailing steps.
        @pl.when(j * n_inner + k < n_tiles)
        def _():
            accumulate()
    else:
        accumulate()

    @pl.when(k == n_inner - 1)
    def _():
        out_ref[...] = acc_ref[...].sum(axis=0, keepdims=True)


def focal_with_logits_loss(predicted, target, *, gamma=GAMMA,
                           binary_targets=True, tile_rows=8192):
    """Pallas TPU implementation of
    FocalWithLogitsLoss(weight=None, gamma=2, reduction='mean')(predicted, target).

    `binary_targets=True` enables the 2-transcendental fast path, exact only
    when every target is 0 or 1; pass False for soft targets in (0, 1).
    Returns a scalar float32."""
    predicted = jnp.asarray(predicted)
    target = jnp.asarray(target)
    assert predicted.shape == target.shape
    n_total = predicted.size
    assert n_total > 0

    pred_flat = predicted.reshape(-1)               # metadata-only, native dtype
    tgt_flat = target.reshape(-1)

    # The copy-free path needs numel % (8*128) == 0; otherwise pad with the
    # zero-loss sentinel (logit=+100, target=1) which leaves the sum unchanged.
    # TODO(synk): a manual-DMA ragged tail would avoid this (rare) full copy.
    pad = (-n_total) % (SUBLANE * LANE)
    if pad:
        pred_flat = jnp.concatenate(
            [pred_flat, jnp.full((pad,), 100.0, pred_flat.dtype)])
        tgt_flat = jnp.concatenate(
            [tgt_flat, jnp.full((pad,), 1.0, tgt_flat.dtype)])

    rows = (n_total + pad) // LANE                  # multiple of 8
    rows3 = rows // SUBLANE

    # Streaming tile size (rows of the (rows,128) view): multiple of 32 so the
    # accumulator splits 4 ways and bf16's (16,128) packing is respected.
    if rows <= 32:
        tile_rows = rows
    else:
        tile_rows = max(32, min(int(tile_rows), rows))
        tile_rows -= tile_rows % 32
    tile3 = tile_rows // SUBLANE
    acc_chunks = 4 if tile3 % 4 == 0 else (2 if tile3 % 2 == 0 else 1)

    n_tiles = pl.cdiv(rows3, tile3)
    n_outer = 2 if n_tiles >= 2 else 1              # both TensorCores on v7x
    n_inner = pl.cdiv(n_tiles, n_outer)
    has_phantom = (n_outer * n_inner != n_tiles)
    mask_tail = (rows3 % tile3 != 0)

    pred3 = pred_flat.reshape(rows3, SUBLANE, LANE)  # metadata-only
    tgt3 = tgt_flat.reshape(rows3, SUBLANE, LANE)

    if has_phantom:
        def in_idx(j, k):
            return (jnp.minimum(j * n_inner + k, n_tiles - 1), 0, 0)
    else:
        def in_idx(j, k):
            return (j * n_inner + k, 0, 0)

    kernel = functools.partial(
        _focal_kernel, gamma=gamma, binary_targets=bool(binary_targets),
        acc_chunks=acc_chunks, n_inner=n_inner, n_tiles=n_tiles, tile3=tile3,
        rows3=rows3, mask_tail=mask_tail, has_phantom=has_phantom)

    in_block_bytes = tile3 * SUBLANE * LANE * (
        pred3.dtype.itemsize + tgt3.dtype.itemsize)
    # 2x double-buffered input blocks + margin; explicit so 8192-row tiles fit
    # v5e's 16 MiB scoped default (and stay well under v7x's 64 MiB physical).
    vmem_limit = int(min(max(2 * in_block_bytes + (4 << 20), 32 << 20), 64 << 20))

    partials = pl.pallas_call(
        kernel,
        out_shape=jax.ShapeDtypeStruct((n_outer, SUBLANE, LANE), jnp.float32),
        grid_spec=pltpu.PrefetchScalarGridSpec(
            num_scalar_prefetch=0,
            grid=(n_outer, n_inner),
            in_specs=[
                pl.BlockSpec((tile3, SUBLANE, LANE), in_idx),
                pl.BlockSpec((tile3, SUBLANE, LANE), in_idx),
            ],
            out_specs=pl.BlockSpec((1, SUBLANE, LANE), lambda j, k: (j, 0, 0)),
            scratch_shapes=[pltpu.VMEM((acc_chunks, SUBLANE, LANE), jnp.float32)],
        ),
        compiler_params=pltpu.CompilerParams(
            dimension_semantics=("parallel", "arbitrary"),
            vmem_limit_bytes=vmem_limit,
        ),
    )(pred3, tgt3)

    # reduction='mean' with weight=None -> plain mean over the true elements.
    return jnp.sum(partials) / jnp.float32(n_total)


def _reference(predicted, target, gamma=GAMMA):
    x = predicted.astype(jnp.float32)
    t = target.astype(jnp.float32)
    bce = jnp.maximum(x, 0.0) - x * t + jnp.log1p(jnp.exp(-jnp.abs(x)))
    pt = jnp.exp(-bce)
    return jnp.mean((1.0 - pt) ** gamma * bce)


if __name__ == "__main__":
    key = jax.random.PRNGKey(0)
    k1, k2, k3, k4, k5 = jax.random.split(key, 5)

    # 1) Small NCHW-like input with binary {0,1} targets (fast path).
    shape = (2, 4, 16, 16)
    predicted = jax.random.normal(k1, shape, dtype=jnp.float32) * 2.0
    target = (jax.random.uniform(k2, shape) > 0.5).astype(jnp.float32)
    loss = jax.block_until_ready(focal_with_logits_loss(predicted, target))
    ref = _reference(predicted, target)
    assert jnp.allclose(loss, ref, rtol=1e-3, atol=1e-6), (loss, ref)

    # 2) Soft targets in (0,1): exact general path.
    soft_t = jax.random.uniform(k3, shape, dtype=jnp.float32)
    loss_s = jax.block_until_ready(
        focal_with_logits_loss(predicted, soft_t, binary_targets=False))
    ref_s = _reference(predicted, soft_t)
    assert jnp.allclose(loss_s, ref_s, rtol=1e-4, atol=1e-6), (loss_s, ref_s)

    # 3) Shape exercising the 2-way outer split, phantom-step skip and the
    #    masked partial tail tile (tile_rows forced small to hit that path).
    shape3 = (11, 32, 32)
    p3 = jax.random.normal(k4, shape3, dtype=jnp.float32) * 2.0
    t3 = (jax.random.uniform(k5, shape3) > 0.5).astype(jnp.float32)
    loss3 = jax.block_until_ready(focal_with_logits_loss(p3, t3, tile_rows=32))
    ref3 = _reference(p3, t3)
    assert jnp.allclose(loss3, ref3, rtol=1e-3, atol=1e-6), (loss3, ref3)

    print("KERNEL_OK")
</pallas_src>

<mosaic_0001>
module attributes {stable_mosaic.version = 11 : i64} {
  func.func @_focal_kernel(%arg0: i32, %arg1: i32, %arg2: memref<2x8x128xf32, #tpu.memory_space<vmem>>, %arg3: memref<2x8x128xf32, #tpu.memory_space<vmem>>, %arg4: memref<1x8x128xf32, #tpu.memory_space<vmem>>, %arg5: memref<2x8x128xf32, #tpu.memory_space<vmem>>) attributes {dimension_semantics = [#tpu.dimension_semantics<parallel>, #tpu.dimension_semantics<arbitrary>], iteration_bounds = array<i64: 1, 1>, scalar_prefetch = 0 : i64, scratch_operands = 1 : i64, tpu.core_type = #tpu.core_type<tc>, window_params = [{transform_indices = @transform_0, window_bounds = array<i64: 2, 8, 128>}, {transform_indices = @transform_1, window_bounds = array<i64: 2, 8, 128>}, {transform_indices = @transform_2, window_bounds = array<i64: 1, 8, 128>}]} {
    %c0_i32 = arith.constant 0 : i32
    %0 = arith.cmpi eq, %arg1, %c0_i32 : i32
    %1 = arith.extui %0 : i1 to i32
    %c0_i32_0 = arith.constant 0 : i32
    %2 = arith.cmpi ne, %1, %c0_i32_0 : i32
    scf.if %2 {
      %cst_27 = arith.constant 0.000000e+00 : f32
      %46 = vector.broadcast %cst_27 : f32 to vector<2x8x128xf32>
      %c0_28 = arith.constant 0 : index
      %c0_29 = arith.constant 0 : index
      %c0_30 = arith.constant 0 : index
      %47 = vector.load %arg5[%c0_28, %c0_29, %c0_30] : memref<2x8x128xf32, #tpu.memory_space<vmem>>, vector<2x8x128xf32>
      tpu.vector_store %arg5[%c0_28, %c0_29, %c0_30], %46 {strides = array<i32>} : memref<2x8x128xf32, #tpu.memory_space<vmem>>, vector<2x8x128xf32>,
    } else {
    }
    %c0 = arith.constant 0 : index
    %c0_1 = arith.constant 0 : index
    %c0_2 = arith.constant 0 : index
    %3 = vector.load %arg2[%c0, %c0_1, %c0_2] : memref<2x8x128xf32, #tpu.memory_space<vmem>>, vector<2x8x128xf32>
    %c0_3 = arith.constant 0 : index
    %c0_4 = arith.constant 0 : index
    %c0_5 = arith.constant 0 : index
    %4 = vector.load %arg3[%c0_3, %c0_4, %c0_5] : memref<2x8x128xf32, #tpu.memory_space<vmem>>, vector<2x8x128xf32>
    %5 = math.absf %3 : vector<2x8x128xf32>
    %cst = arith.constant 0.000000e+00 : f32
    %6 = vector.broadcast %cst : f32 to vector<2x8x128xf32>
    %7 = arith.subf %6, %5 : vector<2x8x128xf32>
    %8 = math.exp %7 : vector<2x8x128xf32>
    %9 = math.log1p %8 : vector<2x8x128xf32>
    %cst_6 = arith.constant 5.000000e-01 : f32
    %10 = vector.broadcast %cst_6 : f32 to vector<2x8x128xf32>
    %11 = arith.cmpf ogt, %4, %10 : vector<2x8x128xf32>
    %cst_7 = arith.constant 0.000000e+00 : f32
    %12 = vector.broadcast %cst_7 : f32 to vector<2x8x128xf32>
    %13 = arith.cmpf oge, %3, %12 : vector<2x8x128xf32>
    %14 = arith.xori %11, %13 : vector<2x8x128xi1>
    %cst_8 = arith.constant dense<true> : vector<2x8x128xi1>
    %15 = arith.xori %14, %cst_8 : vector<2x8x128xi1>
    %cst_9 = arith.constant 0.000000e+00 : f32
    %16 = vector.broadcast %cst_9 : f32 to vector<2x8x128xf32>
    %17 = arith.select %15, %16, %5 : vector<2x8x128xi1>, vector<2x8x128xf32>
    %18 = arith.addf %9, %17 : vector<2x8x128xf32>
    %cst_10 = arith.constant 1.000000e+00 : f32
    %19 = vector.broadcast %cst_10 : f32 to vector<2x8x128xf32>
    %20 = arith.addf %19, %8 : vector<2x8x128xf32>
    %21 = tpu.reciprocal %20 {approx = true} : vector<2x8x128xf32> -> vector<2x8x128xf32>
    %cst_11 = arith.constant 1.000000e+00 : f32
    %22 = vector.broadcast %cst_11 : f32 to vector<2x8x128xf32>
    %23 = arith.select %15, %8, %22 : vector<2x8x128xi1>, vector<2x8x128xf32>
    %24 = arith.mulf %23, %21 : vector<2x8x128xf32>
    %25 = arith.mulf %24, %24 : vector<2x8x128xf32>
    %26 = arith.mulf %25, %18 : vector<2x8x128xf32>
    %c0_12 = arith.constant 0 : index
    %c0_13 = arith.constant 0 : index
    %c0_14 = arith.constant 0 : index
    %27 = vector.load %arg5[%c0_12, %c0_13, %c0_14] : memref<2x8x128xf32, #tpu.memory_space<vmem>>, vector<1x8x128xf32>
    %28 = vector.shape_cast %27 : vector<1x8x128xf32> to vector<8x128xf32>
    %29 = vector.extract_strided_slice %26 {offsets = [0, 0, 0], sizes = [1, 8, 128], strides = [1, 1, 1]} : vector<2x8x128xf32> to vector<1x8x128xf32>
    %cst_15 = arith.constant dense<0.000000e+00> : vector<8x128xf32>
    %30 = vector.multi_reduction <add>, %29, %cst_15 [0] : vector<1x8x128xf32> to vector<8x128xf32>
    %31 = arith.addf %28, %30 : vector<8x128xf32>
    %c0_16 = arith.constant 0 : index
    %c0_17 = arith.constant 0 : index
    %c0_18 = arith.constant 0 : index
    %32 = vector.load %arg5[%c0_16, %c0_17, %c0_18] : memref<2x8x128xf32, #tpu.memory_space<vmem>>, vector<1x8x128xf32>
    %33 = vector.shape_cast %32 : vector<1x8x128xf32> to vector<8x128xf32>
    %34 = vector.shape_cast %31 : vector<8x128xf32> to vector<1x8x128xf32>
    tpu.vector_store %arg5[%c0_16, %c0_17, %c0_18], %34 {strides = array<i32>} : memref<2x8x128xf32, #tpu.memory_space<vmem>>, vector<1x8x128xf32>,
    %c1 = arith.constant 1 : index
    %c0_19 = arith.constant 0 : index
    %c0_20 = arith.constant 0 : index
    %35 = vector.load %arg5[%c1, %c0_19, %c0_20] : memref<2x8x128xf32, #tpu.memory_space<vmem>>, vector<1x8x128xf32>
    %36 = vector.shape_cast %35 : vector<1x8x128xf32> to vector<8x128xf32>
    %37 = vector.extract_strided_slice %26 {offsets = [1, 0, 0], sizes = [1, 8, 128], strides = [1, 1, 1]} : vector<2x8x128xf32> to vector<1x8x128xf32>
    %cst_21 = arith.constant dense<0.000000e+00> : vector<8x128xf32>
    %38 = vector.multi_reduction <add>, %37, %cst_21 [0] : vector<1x8x128xf32> to vector<8x128xf32>
    %39 = arith.addf %36, %38 : vector<8x128xf32>
    %c1_22 = arith.constant 1 : index
    %c0_23 = arith.constant 0 : index
    %c0_24 = arith.constant 0 : index
    %40 = vector.load %arg5[%c1_22, %c0_23, %c0_24] : memref<2x8x128xf32, #tpu.memory_space<vmem>>, vector<1x8x128xf32>
    %41 = vector.shape_cast %40 : vector<1x8x128xf32> to vector<8x128xf32>
    %42 = vector.shape_cast %39 : vector<8x128xf32> to vector<1x8x128xf32>
    tpu.vector_store %arg5[%c1_22, %c0_23, %c0_24], %42 {strides = array<i32>} : memref<2x8x128xf32, #tpu.memory_space<vmem>>, vector<1x8x128xf32>,
    %c0_i32_25 = arith.constant 0 : i32
    %43 = arith.cmpi eq, %arg1, %c0_i32_25 : i32
    %44 = arith.extui %43 : i1 to i32
    %c0_i32_26 = arith.constant 0 : i32
    %45 = arith.cmpi ne, %44, %c0_i32_26 : i32
    scf.if %45 {
      %c0_27 = arith.constant 0 : index
      %c0_28 = arith.constant 0 : index
      %c0_29 = arith.constant 0 : index
      %46 = vector.load %arg5[%c0_27, %c0_28, %c0_29] : memref<2x8x128xf32, #tpu.memory_space<vmem>>, vector<2x8x128xf32>
      %cst_30 = arith.constant dense<0.000000e+00> : vector<8x128xf32>
      %47 = vector.multi_reduction <add>, %46, %cst_30 [0] : vector<2x8x128xf32> to vector<8x128xf32>
      %48 = vector.shape_cast %47 : vector<8x128xf32> to vector<1x8x128xf32>
      %c0_31 = arith.constant 0 : index
      %c0_32 = arith.constant 0 : index
      %c0_33 = arith.constant 0 : index
      %49 = vector.load %arg4[%c0_31, %c0_32, %c0_33] : memref<1x8x128xf32, #tpu.memory_space<vmem>>, vector<1x8x128xf32>
      tpu.vector_store %arg4[%c0_31, %c0_32, %c0_33], %48 {strides = array<i32>} : memref<1x8x128xf32, #tpu.memory_space<vmem>>, vector<1x8x128xf32>,
    } else {
    }
    return
  }
  func.func @transform_0(%arg0: i32, %arg1: i32) -> (i32, i32, i32) {
    %c1_i32 = arith.constant 1 : i32
    %0 = arith.muli %arg0, %c1_i32 : i32
    %1 = arith.addi %0, %arg1 : i32
    %c0_i32 = arith.constant 0 : i32
    %c0_i32_0 = arith.constant 0 : i32
    %c0_i32_1 = arith.constant 0 : i32
    return %1, %c0_i32, %c0_i32_0 : i32, i32, i32
  }
  func.func @transform_1(%arg0: i32, %arg1: i32) -> (i32, i32, i32) {
    %c1_i32 = arith.constant 1 : i32
    %0 = arith.muli %arg0, %c1_i32 : i32
    %1 = arith.addi %0, %arg1 : i32
    %c0_i32 = arith.constant 0 : i32
    %c0_i32_0 = arith.constant 0 : i32
    %c0_i32_1 = arith.constant 0 : i32
    return %1, %c0_i32, %c0_i32_0 : i32, i32, i32
  }
  func.func @transform_2(%arg0: i32, %arg1: i32) -> (i32, i32, i32) {
    %c0_i32 = arith.constant 0 : i32
    %c0_i32_0 = arith.constant 0 : i32
    %c0_i32_1 = arith.constant 0 : i32
    return %arg0, %c0_i32, %c0_i32_0 : i32, i32, i32
  }
}

</mosaic_0001>

<bundles_post_ra>
// kernel: tpu_custom_call.1
= control target key start
LH: loop header
LB: loop body
LE: loop exit
PB: predicated region body
PF: predicated region fallthrough
CT: control target
= control target key end

     0   :  { %7 = vsyncpa [#allocation4], 0  ;;  %s307_s0 = inlined_call_operand.hbm [shape: f32[2,8,128], index: 0, kind: input, shape index: {}]   ;;  %s308_s1 = inlined_call_operand.hbm [shape: f32[2,8,128], index: 1, kind: input, shape index: {}]   ;;  %s309_s2 = inlined_call_operand.hbm [shape: f32[1,8,128], index: 2, kind: output, shape index: {}]  }
   0x1   :  { %8 = vsyncpa [#allocation7], 0 }
   0x2   :  { %9 = vsyncpa [#allocation5], 0  ;;  %s234_s9 = smov [#allocation3]   ;;  %s162_s13 = scalar_lea.hbm %s307_s0, 256 }
   0x3   :  { %s19_s10 = sshll.u32 %s234_s9, 4  ;;  %p163_p0 = scmp.ne.s32.totalorder %s307_s0, %s162_s13  ;;  %s20_s10 = int_to_ptr.vmem [resolvable:$true] %s19_s10 }
   0x4   :  { %p166_p1 = scmp.lt.u32.totalorder %s162_s13, %s307_s0 }
   0x6   :  { %p168_p2 = pnand %p166_p1, %p163_p0 }
   0x8   :  { %171 = shalt.err (!%p168_p2)
}
   0x9   :  { %s172_s18 = scalar_lea.vmem %s20_s10, 256  ;;  %p177_p4 = scmp.lt.s32.totalorder %s20_s10, %s20_s10 }
   0xa   :  { %p173_p3 = scmp.ne.s32.totalorder %s20_s10, %s172_s18  ;;  %p178_p5 = scmp.lt.s32.totalorder %s172_s18, %s172_s18 }
   0xc   :  { %p179_p6 = por %p178_p5, %p177_p4 }
   0xe   :  { %p180_p7 = pnand %p179_p6, %p173_p3 }
  0x10   :  { %183 = shalt.err (!%p180_p7)
}
  0x11   :  { %s235_s19 = smov 128   ;;  %s236_s20 = smov 8  }
  0x12   :  { %25 = dma.hbm_to_vmem [thread:$0]  %s307_s0, 256, %s20_s10, [#allocation4], %s235_s19, %s235_s19, %s236_s20  }
  0x13   :  { %s237_s23 = smov [#allocation6]   ;;  %s184_s27 = scalar_lea.hbm %s308_s1, 256 }
  0x14   :  { %s35_s24 = sshll.u32 %s237_s23, 4  ;;  %p185_p8 = scmp.ne.s32.totalorder %s308_s1, %s184_s27  ;;  %s36_s24 = int_to_ptr.vmem [resolvable:$true] %s35_s24 }
  0x15   :  { %p188_p9 = scmp.lt.u32.totalorder %s184_s27, %s308_s1 }
  0x17   :  { %p190_p10 = pnand %p188_p9, %p185_p8 }
  0x19   :  { %193 = shalt.err (!%p190_p10)
}
  0x1a   :  { %s194_s4 = scalar_lea.vmem %s36_s24, 256  ;;  %p199_p12 = scmp.lt.s32.totalorder %s36_s24, %s36_s24 }
  0x1b   :  { %p195_p11 = scmp.ne.s32.totalorder %s36_s24, %s194_s4  ;;  %p200_p13 = scmp.lt.s32.totalorder %s194_s4, %s194_s4 }
  0x1d   :  { %p201_p0 = por %p200_p13, %p199_p12 }
  0x1f   :  { %p202_p1 = pnand %p201_p0, %p195_p11 }
  0x21   :  { %205 = shalt.err (!%p202_p1)
}
  0x22   :  { %41 = dma.hbm_to_vmem [thread:$0]  %s308_s1, 256, %s36_s24, [#allocation7], %s235_s19, %s235_s19, %s236_s20  }
  0x23   :  { %228 = dma.done.wait [#allocation4], 256  }
  0x24   :  { %229 = vsyncadd [#allocation4], 4294967040 }
  0x25   :  { %230 = dma.done.wait [#allocation7], 256  }
  0x26   :  { %231 = vsyncadd [#allocation7], 4294967040  ;;  %v58_v0 = vld [vmem:[#allocation3] sm:$0xff]  ;;  %v59_v1 = vld [vmem:[#allocation3 + $0x8] sm:$0xff]  ;;  %vm238_vm6 = vmmov 1   ;;  %s239_s1 = smov [#allocation8]  }
  0x27   :  { %v62_v2 = vand.u32 2147483647, %v58_v0  ;;  %v63_v3 = vand.u32 2147483647, %v59_v1  ;;  %v60_v10 = vld [vmem:[#allocation6] sm:$0xff]  ;;  %v61_v12 = vld [vmem:[#allocation6 + $0x8] sm:$0xff] }
  0x28   :  { %vm88_vm0 = vcmp.gt.f32.partialorder %v60_v10, 0.5  ;;  %vm90_vm1 = vcmp.ge.f32.partialorder %v58_v0, 0.0  ;;  %vm89_vm2 = vcmp.gt.f32.partialorder %v61_v12, 0.5  ;;  %vm91_vm3 = vcmp.ge.f32.partialorder %v59_v1, 0.0  ;;  %s134_s6 = sshll.u32 %s239_s1, 4  ;;  %s135_s6 = int_to_ptr.vmem [resolvable:$true] %s134_s6 }
  0x29   :  { %v64_v4 = vsub.f32 0.0, %v62_v2  ;;  %v65_v5 = vsub.f32 0.0, %v63_v3  ;;  %vm92_vm4 = vmxor %vm88_vm0, %vm90_vm1  ;;  %s206_s7 = scalar_lea.vmem %s135_s6, 128  ;;  %p211_p3 = scmp.lt.s32.totalorder %s135_s6, %s135_s6 }
  0x2a   :  { %vm93_vm5 = vmxor %vm89_vm2, %vm91_vm3  ;;  %p207_p2 = scmp.ne.s32.totalorder %s135_s6, %s206_s7  ;;  %p212_p4 = scmp.lt.s32.totalorder %s206_s7, %s206_s7 }
  0x2b   :  { %v66_v6 = vmul.f32 1.442695, %v64_v4  ;;  %v68_v7 = vmul.f32 1.442695, %v65_v5  ;;  %vm279_vm7 = vmxor %vm92_vm4, %vm238_vm6 }
  0x2c   :  { %vm283_vm8 = vmxor %vm93_vm5, %vm238_vm6  ;;  %v96_v28 = vsel %vm279_vm7, 0.0, %v62_v2  ;;  %p213_p5 = por %p212_p4, %p211_p3 }
  0x2d   :  { %150 = vpow2.f32 %v66_v6  ;;  %v97_v32 = vsel %vm283_vm8, 0.0, %v63_v3 }
  0x2e   :  { %152 = vpow2.f32 %v68_v7  ;;  %p214_p6 = pnand %p213_p5, %p207_p2 }
  0x37   :  { %v151_v8 = vpop.eup %150 }
  0x38   :  { %v153_v9 = vpop.eup %152  ;;  %v70_v11 = vadd.f32 1.0, %v151_v8  ;;  %v73_v14 = vmul.f32 -0.5, %v151_v8  ;;  %v76_v17 = vand.u32 2147483647, %v151_v8  ;;  %v104_v25 = vsel %vm279_vm7, %v151_v8, 1.0 }
  0x39   :  { %v79_v13 = vadd.f32 1.0, %v153_v9  ;;  %v82_v15 = vmul.f32 -0.5, %v153_v9  ;;  %v85_v19 = vand.u32 2147483647, %v153_v9  ;;  %v105_v29 = vsel %vm283_vm8, %v153_v9, 1.0 }
  0x3a   :  { %154 = vlog2.f32 %v70_v11  ;;  %v74_v16 = vadd.f32 1.0, %v73_v14  ;;  %vm77_vm9 = vcmp.lt.f32.partialorder %v76_v17, 0.0004427343 }
  0x3b   :  { %156 = vlog2.f32 %v79_v13  ;;  %v83_v18 = vadd.f32 1.0, %v82_v15  ;;  %vm86_vm10 = vcmp.lt.f32.partialorder %v85_v19, 0.0004427343 }
  0x3c   :  { %158 = vrcp.f32 %v70_v11  ;;  %v75_v22 = vmul.f32 %v151_v8, %v74_v16 }
  0x3d   :  { %160 = vrcp.f32 %v79_v13  ;;  %v84_v24 = vmul.f32 %v153_v9, %v83_v18 }
  0x44   :  { %v155_v23 = vpop.eup %154 }
  0x45   :  { %v157_v26 = vpop.eup %156  ;;  %v72_v27 = vmul.f32 0.6931472, %v155_v23 }
  0x46   :  { %v159_v30 = vpop.eup %158  ;;  %v81_v31 = vmul.f32 0.6931472, %v157_v26 }
  0x47   :  { %v161_v33 = vpop.eup %160  ;;  %v78_v34 = vsel %vm77_vm9, %v75_v22, %v72_v27  ;;  %v106_v35 = vmul.f32 %v159_v30, %v104_v25 }
  0x48   :  { %v87_v36 = vsel %vm86_vm10, %v84_v24, %v81_v31  ;;  %v98_v37 = vadd.f32 %v96_v28, %v78_v34  ;;  %v107_v38 = vmul.f32 %v161_v33, %v105_v29 }
  0x49   :  { %v99_v39 = vadd.f32 %v97_v32, %v87_v36  ;;  %v108_v40 = vmul.f32 %v106_v35, %v106_v35 }
  0x4a   :  { %v109_v41 = vmul.f32 %v107_v38, %v107_v38 }
  0x4b   :  { %v110_v42 = vmul.f32 %v108_v40, %v98_v37 }
  0x4c   :  { %v111_v43 = vmul.f32 %v109_v41, %v99_v39 }
  0x4e   :  { %v126_v44 = vadd.f32 %v111_v43, %v110_v42 }
  0x50   :  { %127 = vst [vmem:[#allocation8] sm:$0xff] %v126_v44 }
  0x51   :  { %217 = shalt.err (!%p214_p6)
}
  0x52   :  { %s218_s10 = scalar_lea.hbm %s309_s2, 128 }
  0x53   :  { %p219_p7 = scmp.ne.s32.totalorder %s309_s2, %s218_s10  ;;  %p222_p8 = scmp.lt.u32.totalorder %s218_s10, %s309_s2 }
  0x55   :  { %p224_p9 = pnand %p222_p8, %p219_p7 }
  0x57   :  { %227 = shalt.err (!%p224_p9)
}
  0x58   :  { %137 = dma.vmem_to_hbm [thread:$0]  %s135_s6, 128, %s309_s2, [#allocation5]  }
  0x59   :  { %232 = dma.done.wait [#allocation5], 128  }
  0x5a   :  { %233 = vsyncadd [#allocation5], 4294967168 }
  0x5b   :  { %141 = vsyncpa [#allocation4], 1 }
  0x5c   :  { %142 = vsyncpa [#allocation7], 1 }
  0x5d   :  { %143 = vsyncpa [#allocation5], 1 }

</bundles_post_ra>
